<compile_context>
chip_gen: v7x
topology: tpu7x:2x2x1
jax: 0.10.0
libtpu: 0.0.40
codegen_flags: <defaults>
</compile_context>

<pallas_src>
import jax
import jax.numpy as jnp
from jax.experimental import pallas as pl
from jax.experimental.pallas import tpu as pltpu  # noqa: F401  (TPU backend)

# ---------------- config (small, consistent with the module) ----------------
B = 2          # batch
T = 8          # config.t_len (sequence length)
H = 32         # config.hidden_size == config.embedding_dim
VOCAB = 50     # embedding vocab size (self.embeds)
N_LAYER = 2    # config.n_layer
K = 5          # Conv1d kernel size (padding=2, stride=1)
PAD = K // 2
EPS = 1e-5     # BatchNorm1d default eps
CNN_FLAG = 1   # config.cnn


# ------------------------------- kernels ------------------------------------
def encoder_fused_kernel(e_ref, w_in_ref, b_in_ref, w_conv_ref, b_conv_ref,
                         w_o1_ref, b_o1_ref, w_o2_ref, b_o2_ref, o_ref):
    # ---- self.input: Linear(H, 2H) + GLU -------------------------------
    y = jnp.dot(e_ref[...], w_in_ref[...],
                preferred_element_type=jnp.float32) + b_in_ref[...]
    glu = y[:, :H] * jax.nn.sigmoid(y[:, H:])               # (B*T, H)

    # ---- zero pad the time axis in VMEM (no XLA pad / HBM roundtrip) ----
    glu3 = glu.reshape(B, T, H)
    zpad = jnp.zeros((B, PAD, H), jnp.float32)
    xpad = jnp.concatenate([zpad, glu3, zpad], axis=1)      # (B, T+K-1, H)

    # ---- Conv1d(k=5, pad=2) as ONE im2col matmul; BN pre-folded ---------
    x_cat = jnp.concatenate([xpad[:, k:k + T, :] for k in range(K)],
                            axis=-1)                        # (B, T, K*H)
    x_cat = x_cat.reshape(B * T, K * H)
    conv = jnp.dot(x_cat, w_conv_ref[...],
                   preferred_element_type=jnp.float32) + b_conv_ref[...]
    relu = jnp.maximum(conv, 0.0)                           # (B*T, H) time-major

    # ---- linear_out: torch's channel-major out.view(B, -1) is matched by
    #      a pre-permuted w_o1, so the time-major layout is consumed directly
    relu3 = relu.reshape(B, T, H)
    flat = jnp.concatenate([relu3[:, t, :] for t in range(T)],
                           axis=-1)                         # (B, T*H)
    h = jnp.dot(flat, w_o1_ref[...],
                preferred_element_type=jnp.float32) + b_o1_ref[...]
    out = jnp.dot(h, w_o2_ref[...],
                  preferred_element_type=jnp.float32) + b_o2_ref[...]   # (B, H)

    # ---- out.view(1, B, H).repeat(n_layer, 1, 1) written directly -------
    for l in range(N_LAYER):                                # static unroll
        o_ref[l] = out


def conv_only_kernel(e_ref, w_in_ref, b_in_ref, w_conv_ref, b_conv_ref, o_ref):
    # cnn_flag == 0 branch: GLU -> conv+BN+ReLU -> transpose(1,2) => (B, T, H)
    y = jnp.dot(e_ref[...], w_in_ref[...],
                preferred_element_type=jnp.float32) + b_in_ref[...]
    glu = y[:, :H] * jax.nn.sigmoid(y[:, H:])
    glu3 = glu.reshape(B, T, H)
    zpad = jnp.zeros((B, PAD, H), jnp.float32)
    xpad = jnp.concatenate([zpad, glu3, zpad], axis=1)
    x_cat = jnp.concatenate([xpad[:, k:k + T, :] for k in range(K)],
                            axis=-1).reshape(B * T, K * H)
    conv = jnp.dot(x_cat, w_conv_ref[...],
                   preferred_element_type=jnp.float32) + b_conv_ref[...]
    o_ref[...] = jnp.maximum(conv, 0.0).reshape(B, T, H)


# ------------------------------- wrapper -------------------------------------
def _fold_bn_into_conv(p):
    # Fold BatchNorm1d (running stats) into the conv weight/bias (trace time).
    scale = p["bn_gamma"] * jax.lax.rsqrt(p["bn_var"] + EPS)          # (1, H)
    w = (p["w_conv"] * scale[None, :, :]).reshape(K * H, H)           # (K*H, H)
    b = (p["b_conv"] - p["bn_mean"]) * scale + p["bn_beta"]           # (1, H)
    return w, b


def encoder_cnn_forward(tok, p):
    # Embedding gather stays as tiny XLA glue (no clean Pallas gather at this size).
    emb = jnp.take(p["embed"], tok, axis=0).reshape(B * T, H)

    w_conv_f, b_conv_f = _fold_bn_into_conv(p)

    if CNN_FLAG == 1:
        # Pre-permute w_o1 once so the kernel feeds a time-major (B, T*H)
        # activation while matching torch's channel-major out.view(B, -1).
        w_o1_perm = jnp.transpose(p["w_o1"].reshape(H, T, 4 * H),
                                  (1, 0, 2)).reshape(T * H, 4 * H)
        return pl.pallas_call(
            encoder_fused_kernel,
            out_shape=jax.ShapeDtypeStruct((N_LAYER, B, H), jnp.float32),
        )(emb, p["w_in"], p["b_in"], w_conv_f, b_conv_f,
          w_o1_perm, p["b_o1"], p["w_o2"], p["b_o2"])
    else:
        return pl.pallas_call(
            conv_only_kernel,
            out_shape=jax.ShapeDtypeStruct((B, T, H), jnp.float32),
        )(emb, p["w_in"], p["b_in"], w_conv_f, b_conv_f)


# ------------------------ pure-JAX reference (for check) ---------------------
def reference(tok, p):
    emb = jnp.take(p["embed"], tok, axis=0)
    y = emb @ p["w_in"] + p["b_in"]
    a, g = y[..., :H], y[..., H:]
    glu = a * jax.nn.sigmoid(g)                            # (B, T, H)
    x = jnp.transpose(glu, (0, 2, 1))                      # (B, H, T) like torch
    xpad = jnp.pad(x, ((0, 0), (0, 0), (PAD, PAD)))
    conv = jnp.zeros((B, H, T), jnp.float32)
    for k in range(K):
        conv = conv + jnp.einsum("bct,cd->bdt",
                                 xpad[:, :, k:k + T], p["w_conv"][k])
    conv = conv + p["b_conv"][0][None, :, None]
    scale = p["bn_gamma"][0] / jnp.sqrt(p["bn_var"][0] + EPS)
    bn = ((conv - p["bn_mean"][0][None, :, None]) * scale[None, :, None]
          + p["bn_beta"][0][None, :, None])
    relu = jnp.maximum(bn, 0.0)
    flat = relu.reshape(B, -1)                             # channel-major flatten
    h = flat @ p["w_o1"] + p["b_o1"]
    o = h @ p["w_o2"] + p["b_o2"]
    return jnp.tile(o.reshape(1, B, H), (N_LAYER, 1, 1))


# ------------------------------ param init -----------------------------------
def init_params(key):
    ks = jax.random.split(key, 12)
    s = 0.05
    return {
        "embed":    s * jax.random.normal(ks[0], (VOCAB, H), jnp.float32),
        "w_in":     s * jax.random.normal(ks[1], (H, 2 * H), jnp.float32),
        "b_in":     s * jax.random.normal(ks[2], (1, 2 * H), jnp.float32),
        "w_conv":   s * jax.random.normal(ks[3], (K, H, H), jnp.float32),
        "b_conv":   s * jax.random.normal(ks[4], (1, H), jnp.float32),
        "bn_gamma": 1.0 + s * jax.random.normal(ks[5], (1, H), jnp.float32),
        "bn_beta":  s * jax.random.normal(ks[6], (1, H), jnp.float32),
        "bn_mean":  s * jax.random.normal(ks[7], (1, H), jnp.float32),
        "bn_var":   0.5 + jnp.abs(s * jax.random.normal(ks[8], (1, H),
                                                        jnp.float32)),
        "w_o1":     s * jax.random.normal(ks[9], (H * T, 4 * H), jnp.float32),
        "b_o1":     s * jax.random.normal(ks[10], (1, 4 * H), jnp.float32),
        "w_o2":     s * jax.random.normal(ks[11], (4 * H, H), jnp.float32),
        "b_o2":     jnp.zeros((1, H), jnp.float32),
    }


if __name__ == "__main__":
    key = jax.random.PRNGKey(0)
    k_tok, k_param = jax.random.split(key)
    tok = jax.random.randint(k_tok, (B, T), 0, VOCAB)      # x: token ids (B, T)
    params = init_params(k_param)

    out = jax.block_until_ready(encoder_cnn_forward(tok, params))
    ref = jax.block_until_ready(reference(tok, params))

    assert out.shape == (N_LAYER, B, H), out.shape
    assert jnp.allclose(out, ref, rtol=1e-4, atol=1e-4), (
        float(jnp.max(jnp.abs(out - ref))))
    print("KERNEL_OK")
</pallas_src>

<mosaic_0001>
module attributes {stable_mosaic.version = 11 : i64} {
  func.func @encoder_fused_kernel(%arg0: memref<16x32xf32, #tpu.memory_space<vmem>>, %arg1: memref<32x64xf32, #tpu.memory_space<vmem>>, %arg2: memref<1x64xf32, #tpu.memory_space<vmem>>, %arg3: memref<160x32xf32, #tpu.memory_space<vmem>>, %arg4: memref<1x32xf32, #tpu.memory_space<vmem>>, %arg5: memref<256x128xf32, #tpu.memory_space<vmem>>, %arg6: memref<1x128xf32, #tpu.memory_space<vmem>>, %arg7: memref<128x32xf32, #tpu.memory_space<vmem>>, %arg8: memref<1x32xf32, #tpu.memory_space<vmem>>, %arg9: memref<2x2x32xf32, #tpu.memory_space<vmem>>) attributes {dimension_semantics = [], scalar_prefetch = 0 : i64, scratch_operands = 0 : i64, tpu.core_type = #tpu.core_type<tc>} {
    %c0 = arith.constant 0 : index
    %c0_0 = arith.constant 0 : index
    %0 = vector.load %arg0[%c0, %c0_0] : memref<16x32xf32, #tpu.memory_space<vmem>>, vector<16x32xf32>
    %c0_1 = arith.constant 0 : index
    %c0_2 = arith.constant 0 : index
    %1 = vector.load %arg1[%c0_1, %c0_2] : memref<32x64xf32, #tpu.memory_space<vmem>>, vector<32x64xf32>
    %cst = arith.constant dense<0.000000e+00> : vector<16x64xf32>
    %2 = tpu.matmul %0, %1, %cst {dimension_numbers = #tpu.dot_dimension_numbers<[1], [0], [0], [1], [0, 0, 1, 1], [], []>} : vector<16x32xf32>, vector<32x64xf32>, vector<16x64xf32> -> vector<16x64xf32>
    %c0_3 = arith.constant 0 : index
    %c0_4 = arith.constant 0 : index
    %3 = vector.load %arg2[%c0_3, %c0_4] : memref<1x64xf32, #tpu.memory_space<vmem>>, vector<1x64xf32>
    %4 = vector.broadcast %3 : vector<1x64xf32> to vector<16x64xf32>
    %5 = arith.addf %2, %4 : vector<16x64xf32>
    %6 = vector.extract_strided_slice %5 {offsets = [0, 0], sizes = [16, 32], strides = [1, 1]} : vector<16x64xf32> to vector<16x32xf32>
    %7 = vector.extract_strided_slice %5 {offsets = [0, 32], sizes = [16, 32], strides = [1, 1]} : vector<16x64xf32> to vector<16x32xf32>
    %8 = arith.negf %7 : vector<16x32xf32>
    %9 = math.exp %8 : vector<16x32xf32>
    %cst_5 = arith.constant 1.000000e+00 : f32
    %10 = vector.broadcast %cst_5 : f32 to vector<16x32xf32>
    %11 = arith.addf %10, %9 : vector<16x32xf32>
    %12 = arith.divf %10, %11 : vector<16x32xf32>
    %13 = arith.mulf %6, %12 : vector<16x32xf32>
    %14 = vector.shape_cast %13 : vector<16x32xf32> to vector<2x8x32xf32>
    %cst_6 = arith.constant 0.000000e+00 : f32
    %15 = vector.broadcast %cst_6 : f32 to vector<2x2x32xf32>
    %16 = tpu.concatenate %15, %14, %15 in 1 : vector<2x2x32xf32>, vector<2x8x32xf32>, vector<2x2x32xf32> -> vector<2x12x32xf32>
    %17 = vector.extract_strided_slice %16 {offsets = [0, 0, 0], sizes = [2, 8, 32], strides = [1, 1, 1]} : vector<2x12x32xf32> to vector<2x8x32xf32>
    %18 = vector.extract_strided_slice %16 {offsets = [0, 1, 0], sizes = [2, 8, 32], strides = [1, 1, 1]} : vector<2x12x32xf32> to vector<2x8x32xf32>
    %19 = vector.extract_strided_slice %16 {offsets = [0, 2, 0], sizes = [2, 8, 32], strides = [1, 1, 1]} : vector<2x12x32xf32> to vector<2x8x32xf32>
    %20 = vector.extract_strided_slice %16 {offsets = [0, 3, 0], sizes = [2, 8, 32], strides = [1, 1, 1]} : vector<2x12x32xf32> to vector<2x8x32xf32>
    %21 = vector.extract_strided_slice %16 {offsets = [0, 4, 0], sizes = [2, 8, 32], strides = [1, 1, 1]} : vector<2x12x32xf32> to vector<2x8x32xf32>
    %22 = tpu.concatenate %17, %18, %19, %20, %21 in 2 : vector<2x8x32xf32>, vector<2x8x32xf32>, vector<2x8x32xf32>, vector<2x8x32xf32>, vector<2x8x32xf32> -> vector<2x8x160xf32>
    %23 = vector.shape_cast %22 : vector<2x8x160xf32> to vector<16x160xf32>
    %c0_7 = arith.constant 0 : index
    %c0_8 = arith.constant 0 : index
    %24 = vector.load %arg3[%c0_7, %c0_8] : memref<160x32xf32, #tpu.memory_space<vmem>>, vector<160x32xf32>
    %cst_9 = arith.constant dense<0.000000e+00> : vector<16x32xf32>
    %25 = tpu.matmul %23, %24, %cst_9 {dimension_numbers = #tpu.dot_dimension_numbers<[1], [0], [0], [1], [0, 0, 1, 1], [], []>} : vector<16x160xf32>, vector<160x32xf32>, vector<16x32xf32> -> vector<16x32xf32>
    %c0_10 = arith.constant 0 : index
    %c0_11 = arith.constant 0 : index
    %26 = vector.load %arg4[%c0_10, %c0_11] : memref<1x32xf32, #tpu.memory_space<vmem>>, vector<1x32xf32>
    %27 = vector.broadcast %26 : vector<1x32xf32> to vector<16x32xf32>
    %28 = arith.addf %25, %27 : vector<16x32xf32>
    %cst_12 = arith.constant 0.000000e+00 : f32
    %29 = vector.broadcast %cst_12 : f32 to vector<16x32xf32>
    %30 = arith.maximumf %28, %29 : vector<16x32xf32>
    %31 = vector.shape_cast %30 : vector<16x32xf32> to vector<2x8x32xf32>
    %32 = vector.extract_strided_slice %31 {offsets = [0, 0, 0], sizes = [2, 1, 32], strides = [1, 1, 1]} : vector<2x8x32xf32> to vector<2x1x32xf32>
    %33 = vector.shape_cast %32 : vector<2x1x32xf32> to vector<2x32xf32>
    %34 = vector.extract_strided_slice %31 {offsets = [0, 1, 0], sizes = [2, 1, 32], strides = [1, 1, 1]} : vector<2x8x32xf32> to vector<2x1x32xf32>
    %35 = vector.shape_cast %34 : vector<2x1x32xf32> to vector<2x32xf32>
    %36 = vector.extract_strided_slice %31 {offsets = [0, 2, 0], sizes = [2, 1, 32], strides = [1, 1, 1]} : vector<2x8x32xf32> to vector<2x1x32xf32>
    %37 = vector.shape_cast %36 : vector<2x1x32xf32> to vector<2x32xf32>
    %38 = vector.extract_strided_slice %31 {offsets = [0, 3, 0], sizes = [2, 1, 32], strides = [1, 1, 1]} : vector<2x8x32xf32> to vector<2x1x32xf32>
    %39 = vector.shape_cast %38 : vector<2x1x32xf32> to vector<2x32xf32>
    %40 = vector.extract_strided_slice %31 {offsets = [0, 4, 0], sizes = [2, 1, 32], strides = [1, 1, 1]} : vector<2x8x32xf32> to vector<2x1x32xf32>
    %41 = vector.shape_cast %40 : vector<2x1x32xf32> to vector<2x32xf32>
    %42 = vector.extract_strided_slice %31 {offsets = [0, 5, 0], sizes = [2, 1, 32], strides = [1, 1, 1]} : vector<2x8x32xf32> to vector<2x1x32xf32>
    %43 = vector.shape_cast %42 : vector<2x1x32xf32> to vector<2x32xf32>
    %44 = vector.extract_strided_slice %31 {offsets = [0, 6, 0], sizes = [2, 1, 32], strides = [1, 1, 1]} : vector<2x8x32xf32> to vector<2x1x32xf32>
    %45 = vector.shape_cast %44 : vector<2x1x32xf32> to vector<2x32xf32>
    %46 = vector.extract_strided_slice %31 {offsets = [0, 7, 0], sizes = [2, 1, 32], strides = [1, 1, 1]} : vector<2x8x32xf32> to vector<2x1x32xf32>
    %47 = vector.shape_cast %46 : vector<2x1x32xf32> to vector<2x32xf32>
    %48 = tpu.concatenate %33, %35, %37, %39, %41, %43, %45, %47 in 1 : vector<2x32xf32>, vector<2x32xf32>, vector<2x32xf32>, vector<2x32xf32>, vector<2x32xf32>, vector<2x32xf32>, vector<2x32xf32>, vector<2x32xf32> -> vector<2x256xf32>
    %c0_13 = arith.constant 0 : index
    %c0_14 = arith.constant 0 : index
    %49 = vector.load %arg5[%c0_13, %c0_14] : memref<256x128xf32, #tpu.memory_space<vmem>>, vector<256x128xf32>
    %cst_15 = arith.constant dense<0.000000e+00> : vector<2x128xf32>
    %50 = tpu.matmul %48, %49, %cst_15 {dimension_numbers = #tpu.dot_dimension_numbers<[1], [0], [0], [1], [0, 0, 1, 1], [], []>} : vector<2x256xf32>, vector<256x128xf32>, vector<2x128xf32> -> vector<2x128xf32>
    %c0_16 = arith.constant 0 : index
    %c0_17 = arith.constant 0 : index
    %51 = vector.load %arg6[%c0_16, %c0_17] : memref<1x128xf32, #tpu.memory_space<vmem>>, vector<1x128xf32>
    %52 = vector.broadcast %51 : vector<1x128xf32> to vector<2x128xf32>
    %53 = arith.addf %50, %52 : vector<2x128xf32>
    %c0_18 = arith.constant 0 : index
    %c0_19 = arith.constant 0 : index
    %54 = vector.load %arg7[%c0_18, %c0_19] : memref<128x32xf32, #tpu.memory_space<vmem>>, vector<128x32xf32>
    %cst_20 = arith.constant dense<0.000000e+00> : vector<2x32xf32>
    %55 = tpu.matmul %53, %54, %cst_20 {dimension_numbers = #tpu.dot_dimension_numbers<[1], [0], [0], [1], [0, 0, 1, 1], [], []>} : vector<2x128xf32>, vector<128x32xf32>, vector<2x32xf32> -> vector<2x32xf32>
    %c0_21 = arith.constant 0 : index
    %c0_22 = arith.constant 0 : index
    %56 = vector.load %arg8[%c0_21, %c0_22] : memref<1x32xf32, #tpu.memory_space<vmem>>, vector<1x32xf32>
    %57 = vector.broadcast %56 : vector<1x32xf32> to vector<2x32xf32>
    %58 = arith.addf %55, %57 : vector<2x32xf32>
    %c0_23 = arith.constant 0 : index
    %c0_24 = arith.constant 0 : index
    %c0_25 = arith.constant 0 : index
    %59 = vector.load %arg9[%c0_23, %c0_24, %c0_25] : memref<2x2x32xf32, #tpu.memory_space<vmem>>, vector<1x2x32xf32>
    %60 = vector.shape_cast %59 : vector<1x2x32xf32> to vector<2x32xf32>
    %61 = vector.shape_cast %58 : vector<2x32xf32> to vector<1x2x32xf32>
    tpu.vector_store %arg9[%c0_23, %c0_24, %c0_25], %61 {strides = array<i32>} : memref<2x2x32xf32, #tpu.memory_space<vmem>>, vector<1x2x32xf32>,
    %c1 = arith.constant 1 : index
    %c0_26 = arith.constant 0 : index
    %c0_27 = arith.constant 0 : index
    %62 = vector.load %arg9[%c1, %c0_26, %c0_27] : memref<2x2x32xf32, #tpu.memory_space<vmem>>, vector<1x2x32xf32>
    %63 = vector.shape_cast %62 : vector<1x2x32xf32> to vector<2x32xf32>
    %64 = vector.shape_cast %58 : vector<2x32xf32> to vector<1x2x32xf32>
    tpu.vector_store %arg9[%c1, %c0_26, %c0_27], %64 {strides = array<i32>} : memref<2x2x32xf32, #tpu.memory_space<vmem>>, vector<1x2x32xf32>,
    return
  }
}

</mosaic_0001>

<bundles_post_ra>
// kernel: tpu_custom_call.1
= control target key start
LH: loop header
LB: loop body
LE: loop exit
PB: predicated region body
PF: predicated region fallthrough
CT: control target
= control target key end

     0   :  { %vm46_vm0 = vcmask 261120   ;;  %s1240_s0 = inlined_call_operand.vmem [shape: f32[16,32], index: 0, kind: input, shape index: {}]   ;;  %s1241_s1 = inlined_call_operand.vmem [shape: f32[32,64], index: 1, kind: input, shape index: {}]   ;;  %s1242_s2 = inlined_call_operand.vmem [shape: f32[1,64], index: 2, kind: input, shape index: {}]   ;;  %s1243_s3 = inlined_call_operand.vmem [shape: f32[160,32], index: 3, kind: input, shape index: {}]   ;;  %s1244_s4 = inlined_call_operand.vmem [shape: f32[1,32], index: 4, kind: input, shape index: {}]   ;;  %s1245_s5 = inlined_call_operand.vmem [shape: f32[256,128], index: 5, kind: input, shape index: {}]   ;;  %s1246_s6 = inlined_call_operand.vmem [shape: f32[1,128], index: 6, kind: input, shape index: {}]   ;;  %s1247_s7 = inlined_call_operand.vmem [shape: f32[128,32], index: 7, kind: input, shape index: {}]   ;;  %s1248_s8 = inlined_call_operand.vmem [shape: f32[1,32], index: 8, kind: input, shape index: {}]   ;;  %s1249_s9 = inlined_call_operand.hbm [shape: f32[2,2,32], index: 9, kind: output, shape index: {}]  }
   0x1   :  { %v35_v0 = vld [vmem:[%s1241_s1] sm:$0xff]  ;;  %v36_v1 = vld [vmem:[%s1241_s1 + $0x8] sm:$0xff]  ;;  %v37_v2 = vld [vmem:[%s1241_s1 + $0x10] sm:$0xff] }
   0x2   :  { %v714_v3 = vpack.c.bf16 %v36_v1, %v35_v0  ;;  %v38_v4 = vld [vmem:[%s1241_s1 + $0x18] sm:$0xff]  ;;  %v33_v5 = vld [vmem:[%s1240_s0] sm:$0xff] }
   0x3   :  { %v718_v6 = vpack.c.bf16 %v38_v4, %v37_v2  ;;  %676 = vmatprep.mubr.msk.f32.mxu1 %vm46_vm0, %v33_v5 }
   0x4   :  { %14 = vsyncpa [#allocation3], 0  ;;  %715 = vmatprep.subr.bf16.mxu1 %v714_v3  ;;  %v34_v7 = vld [vmem:[%s1240_s0 + $0x8] sm:$0xff]  ;;  %v600_v8 = vld [vmem:[%s1242_s2] ss:$0 sm:$0xff]  ;;  %s863_s0 = smov 96  }
   0x5   :  { %717 = vmatpush3.bf16.msra.mxu1 %v714_v3  ;;  %v219_v21 = vld [vmem:[%s1243_s3] sm:$0xff]  ;;  %v220_v22 = vld [vmem:[%s1243_s3 + $0x8] sm:$0xff]  ;;  %v221_v23 = vld [vmem:[%s1243_s3 + $0x10] sm:$0xff]  ;;  %v864_v24 = vmov 0.0|0.0   ;;  %vm156_vm1 = vcmask 1041408   ;;  %vm204_vm2 = vcmask 1043456  }
   0x6   :  { %719 = vmatprep.subr.bf16.mxu1 %v718_v6  ;;  %v723_v25 = vpack.c.bf16 %v220_v22, %v219_v21  ;;  %v222_v26 = vld [vmem:[%s1243_s3 + $0x18] sm:$0xff]  ;;  %v223_v28 = vld [vmem:[%s1243_s3 + $0x20] sm:$0xff]  ;;  %v224_v29 = vld [vmem:[%s1243_s3 + $0x28] sm:$0xff]  ;;  %vm191_vm3 = vcmask 1044480   ;;  %vm165_vm4 = vcmask 1046528   ;;  %vm178_vm5 = vcmask 1045504  }
   0x7   :  { %v726_v27 = vpack.c.bf16 %v222_v26, %v221_v23  ;;  %v729_v30 = vpack.c.bf16 %v224_v29, %v223_v28  ;;  %v225_v31 = vld [vmem:[%s1243_s3 + $0x30] sm:$0xff]  ;;  %v226_v32 = vld [vmem:[%s1243_s3 + $0x38] sm:$0xff]  ;;  %v227_v34 = vld [vmem:[%s1243_s3 + $0x40] sm:$0xff]  ;;  %s866_s17 = smov 64   ;;  %vm213_vm6 = vcmask 523264   ;;  %vm216_vm7 = vcmask 785408  }
   0x8   :  { %v732_v33 = vpack.c.bf16 %v226_v32, %v225_v31  ;;  %v228_v35 = vld [vmem:[%s1243_s3 + $0x48] sm:$0xff]  ;;  %v229_v37 = vld [vmem:[%s1243_s3 + $0x50] sm:$0xff]  ;;  %v230_v38 = vld [vmem:[%s1243_s3 + $0x58] sm:$0xff]  ;;  %vm330_vm8 = vcmask 1041409   ;;  %vm867_vm9 = vmmov 0   ;;  %s869_s22 = smov [#allocation2]  }
   0x9   :  { %721 = vmatpush3.bf16.msra.mxu1 %v718_v6  ;;  %v735_v36 = vpack.c.bf16 %v228_v35, %v227_v34  ;;  %v738_v39 = vpack.c.bf16 %v230_v38, %v229_v37  ;;  %v231_v40 = vld [vmem:[%s1243_s3 + $0x60] sm:$0xff]  ;;  %v232_v41 = vld [vmem:[%s1243_s3 + $0x68] sm:$0xff]  ;;  %v233_v43 = vld [vmem:[%s1243_s3 + $0x70] sm:$0xff]  ;;  %vm580_vm10 = vcmask 254976  }
   0xa   :  { %722 = vmatprep.subr.bf16.mxu1 %v864_v24  ;;  %v741_v42 = vpack.c.bf16 %v232_v41, %v231_v40  ;;  %v234_v44 = vld [vmem:[%s1243_s3 + $0x78] sm:$0xff]  ;;  %v235_v46 = vld [vmem:[%s1243_s3 + $0x80] sm:$0xff]  ;;  %v236_v47 = vld [vmem:[%s1243_s3 + $0x88] sm:$0xff] }
   0xb   :  { %v744_v45 = vpack.c.bf16 %v234_v44, %v233_v43  ;;  %v747_v48 = vpack.c.bf16 %v236_v47, %v235_v46  ;;  %v237_v49 = vld [vmem:[%s1243_s3 + $0x90] sm:$0xff]  ;;  %v238_v50 = vld [vmem:[%s1243_s3 + $0x98] sm:$0xff]  ;;  %s865_s3 = smov 32   ;;  %v394_v35 = vld [vmem:[%s1245_s5 + $0x80] sm:$0xff] }
   0xc   :  { %677 = vmatmul.mubr.msk.f32.vlgmr.msra.gmra.mrb[0].mxu1 %vm46_vm0, %v34_v7  ;;  %v750_v51 = vpack.c.bf16 %v238_v50, %v237_v49  ;;  %v378_v37 = vld [vmem:[%s1245_s5] sm:$0xff]  ;;  %v396_v40 = vld [vmem:[%s1245_s5 + $0x90] sm:$0xff]  ;;  %v397_v41 = vld [vmem:[%s1245_s5 + $0x98] sm:$0xff] }
   0xd   :  { %724 = vmatpush1.bf16.msra.mxu1 %v723_v25  ;;  %v756_v43 = vpack.c.bf16 %v397_v41, %v396_v40  ;;  %v380_v44 = vld [vmem:[%s1245_s5 + $0x10] sm:$0xff]  ;;  %v398_v46 = vld [vmem:[%s1245_s5 + $0xa0] sm:$0xff]  ;;  %v399_v47 = vld [vmem:[%s1245_s5 + $0xa8] sm:$0xff] }
   0xe   :  { %725 = vmatprep.subr.bf16.mxu1 %v864_v24  ;;  %v760_v49 = vpack.c.bf16 %v399_v47, %v398_v46  ;;  %v382_v50 = vld [vmem:[%s1245_s5 + $0x20] sm:$0xff] }
  0x11   :  { %727 = vmatpush1.bf16.msra.mxu1 %v726_v27 }
  0x12   :  { %728 = vmatprep.subr.bf16.mxu1 %v864_v24 }
  0x15   :  { %730 = vmatpush1.bf16.msra.mxu1 %v729_v30 }
  0x16   :  { %731 = vmatprep.subr.bf16.mxu1 %v864_v24 }
  0x19   :  { %733 = vmatpush1.bf16.msra.mxu1 %v732_v33 }
  0x1a   :  { %734 = vmatprep.subr.bf16.mxu1 %v864_v24 }
  0x1d   :  { %736 = vmatpush1.bf16.msra.mxu1 %v735_v36  ;;  %v395_v36 = vld [vmem:[%s1245_s5 + $0x88] sm:$0xff] }
  0x1e   :  { %737 = vmatprep.subr.bf16.mxu1 %v864_v24  ;;  %v752_v38 = vpack.c.bf16 %v395_v36, %v394_v35 }
  0x20   :  { %753 = vmatprep.subr.bf16.mxu0 %v752_v38 }
  0x21   :  { %739 = vmatpush1.bf16.msra.mxu1 %v738_v39  ;;  %v379_v39 = vld [vmem:[%s1245_s5 + $0x8] sm:$0xff] }
  0x22   :  { %740 = vmatprep.subr.bf16.mxu1 %v864_v24 }
  0x25   :  { %742 = vmatpush1.bf16.msra.mxu1 %v741_v42  ;;  %v754_v42 = vpack.c.bf16 %v379_v39, %v378_v37 }
  0x26   :  { %743 = vmatprep.subr.bf16.mxu1 %v864_v24 }
  0x27   :  { %755 = vmatpush3.bf16.msra.mxu0 %v754_v42 }
  0x28   :  { %757 = vmatprep.subr.bf16.mxu0 %v756_v43 }
  0x29   :  { %745 = vmatpush1.bf16.msra.mxu1 %v744_v45  ;;  %v381_v45 = vld [vmem:[%s1245_s5 + $0x18] sm:$0xff] }
  0x2a   :  { %746 = vmatprep.subr.bf16.mxu1 %v864_v24 }
  0x2d   :  { %748 = vmatpush1.bf16.msra.mxu1 %v747_v48  ;;  %v758_v48 = vpack.c.bf16 %v381_v45, %v380_v44 }
  0x2e   :  { %749 = vmatprep.subr.bf16.mxu1 %v864_v24 }
  0x2f   :  { %759 = vmatpush3.bf16.msra.mxu0 %v758_v48 }
  0x30   :  { %761 = vmatprep.subr.bf16.mxu0 %v760_v49 }
  0x31   :  { %751 = vmatpush1.bf16.msra.mxu1 %v750_v51  ;;  %v383_v51 = vld [vmem:[%s1245_s5 + $0x28] sm:$0xff] }
  0xdf   :  { %v678_v9 = vpop.f32.mrb[0].mxu1 }
  0xe0   :  { %v944_v10 = vadd.f32 %v678_v9, %v600_v8  ;;  %v119_v11 = vpop.f32.mrb[1].mxu1 }
  0xe1   :  { %v946_v12 = vadd.f32 %v600_v8, %v119_v11 }
  0xe2   :  { %v604_v13 = vmul.f32 -1.442695, %v944_v10 }
  0xe3   :  { %v603_v14 = vmul.f32 -1.442695, %v946_v12 }
  0xe4   :  { %831 = vpow2.f32 %v604_v13 }
  0xe5   :  { %833 = vpow2.f32 %v603_v14 }
  0xee   :  { %v832_v15 = vpop.eup %831 }
  0xef   :  { %v834_v16 = vpop.eup %833  ;;  %v135_v18 = vadd.f32 1.0, %v832_v15 }
  0xf0   :  { %v134_v17 = vadd.f32 1.0, %v834_v16 }
  0xf2   :  { %835 = vrcp.f32 %v134_v17 }
  0xf3   :  { %837 = vrcp.f32 %v135_v18 }
  0xfc   :  { %v836_v19 = vpop.eup %835 }
  0xfd   :  { %142 = vrot.lane.b32.xlu0 %v836_v19, %s863_s0  ;;  %v838_v20 = vpop.eup %837 }
 0x101   :  { %144 = vrot.lane.b32.xlu0 %v838_v20, %s863_s0 }
 0x16f   :  { %v143_v52 = vpop.permute.xlu0 %142 }
 0x170   :  { %v148_v53 = vmul.f32 %v143_v52, %v946_v12  ;;  %v400_v52 = vld [vmem:[%s1245_s5 + $0xb0] sm:$0xff] }
 0x172   :  { %v152_v54 = vrot.slane %v148_v53, 6  ;;  %v401_v53 = vld [vmem:[%s1245_s5 + $0xb8] sm:$0xff] }
 0x173   :  { %v145_v55 = vpop.permute.xlu0 %144 }
 0x174   :  { %v157_v56 = vsel %vm156_vm1, 0.0, %v152_v54  ;;  %v159_v57 = vsel %vm156_vm1, %v152_v54, 0.0  ;;  %v149_v58 = vmul.f32 %v145_v55, %v944_v10  ;;  %v762_v54 = vpack.c.bf16 %v383_v51, %v382_v50 }
 0x175   :  { %v206_v59 = vrot.slane %v159_v57, 4  ;;  %v205_v60 = vrot.slane %v157_v56, 4  ;;  %v192_v61 = vrot.slane %v157_v56, 3  ;;  %v193_v62 = vrot.slane %v159_v57, 3 }
 0x176   :  { %v153_v63 = vrot.slane %v149_v58, 6  ;;  %v166_v0 = vrot.slane %v157_v56, 1  ;;  %v167_v1 = vrot.slane %v159_v57, 1  ;;  %v179_v4 = vrot.slane %v157_v56, 2  ;;  %v402_v58 = vld [vmem:[%s1245_s5 + $0xc0] sm:$0xff]  ;;  %763 = vmatpush3.bf16.msra.mxu0 %v762_v54 }
 0x177   :  { %v207_v2 = vsel %vm204_vm2, %v205_v60, %v206_v59  ;;  %v194_v3 = vsel %vm191_vm3, %v192_v61, %v193_v62  ;;  %v180_v8 = vrot.slane %v159_v57, 2  ;;  %v764_v55 = vpack.c.bf16 %v401_v53, %v400_v52  ;;  %v385_v57 = vld [vmem:[%s1245_s5 + $0x38] sm:$0xff]  ;;  %v403_v59 = vld [vmem:[%s1245_s5 + $0xc8] sm:$0xff]  ;;  %v386_v62 = vld [vmem:[%s1245_s5 + $0x40] sm:$0xff] }
 0x178   :  { %v158_v5 = vsel %vm156_vm1, 0.0, %v153_v63  ;;  %v160_v6 = vsel %vm156_vm1, %v153_v63, 0.0  ;;  %606 = vmatprep.mubr.msk.f32.mxu1 %vm46_vm0, %v207_v2  ;;  %198 = vrot.lane.b32.xlu0 %v194_v3, %s863_s0  ;;  %v168_v7 = vsel %vm165_vm4, %v166_v0, %v167_v1  ;;  %v768_v61 = vpack.c.bf16 %v403_v59, %v402_v58  ;;  %v387_v63 = vld [vmem:[%s1245_s5 + $0x48] sm:$0xff]  ;;  %v404_v0 = vld [vmem:[%s1245_s5 + $0xd0] sm:$0xff]  ;;  %v405_v1 = vld [vmem:[%s1245_s5 + $0xd8] sm:$0xff] }
 0x179   :  { %v209_v9 = vrot.slane %v160_v6, 4  ;;  %172 = vrot.lane.b32.xlu1 %v168_v7, %s865_s3  ;;  %v182_v10 = vrot.slane %v158_v5, 2  ;;  %v183_v11 = vrot.slane %v160_v6, 2  ;;  %v208_v13 = vrot.slane %v158_v5, 4  ;;  %765 = vmatprep.subr.bf16.mxu0 %v764_v55  ;;  %v605_v7 = vld [vmem:[%s1244_s4] ss:$0 sm:$0xff] }
 0x17a   :  { %v181_v14 = vsel %vm178_vm5, %v179_v4, %v180_v8  ;;  %v169_v15 = vrot.slane %v158_v5, 1  ;;  %v170_v16 = vrot.slane %v160_v6, 1  ;;  %v195_v19 = vrot.slane %v158_v5, 3  ;;  %v388_v4 = vld [vmem:[%s1245_s5 + $0x50] sm:$0xff] }
 0x17b   :  { %v184_v12 = vsel %vm178_vm5, %v182_v10, %v183_v11  ;;  %v210_v17 = vsel %vm204_vm2, %v208_v13, %v209_v9  ;;  %v196_v20 = vrot.slane %v160_v6, 3  ;;  %v770_v2 = vpack.c.bf16 %v387_v63, %v386_v62  ;;  %v406_v11 = vld [vmem:[%s1245_s5 + $0xe0] sm:$0xff]  ;;  %v488_v63 = vld [vmem:[%s1247_s7 + $0x8] sm:$0xff] }
 0x17c   :  { %187 = vrot.lane.b32.xlu0 %v184_v12, %s866_s17  ;;  %v171_v18 = vsel %vm165_vm4, %v169_v15, %v170_v16  ;;  %v772_v3 = vpack.c.bf16 %v405_v1, %v404_v0  ;;  %v407_v12 = vld [vmem:[%s1245_s5 + $0xe8] sm:$0xff]  ;;  %v487_v62 = vld [vmem:[%s1247_s7] sm:$0xff] }
 0x17d   :  { %185 = vrot.lane.b32.xlu1 %v181_v14, %s866_s17  ;;  %v197_v21 = vsel %vm191_vm3, %v195_v19, %v196_v20  ;;  %v776_v13 = vpack.c.bf16 %v407_v12, %v406_v11  ;;  %v390_v14 = vld [vmem:[%s1245_s5 + $0x60] sm:$0xff]  ;;  %v391_v15 = vld [vmem:[%s1245_s5 + $0x68] sm:$0xff]  ;;  %v409_v19 = vld [vmem:[%s1245_s5 + $0xf8] sm:$0xff] }
 0x17e   :  { %v778_v16 = vpack.c.bf16 %v391_v15, %v390_v14  ;;  %v491_v11 = vld [vmem:[%s1247_s7 + $0x20] sm:$0xff]  ;;  %v492_v12 = vld [vmem:[%s1247_s7 + $0x28] sm:$0xff]  ;;  %v493_v14 = vld [vmem:[%s1247_s7 + $0x30] sm:$0xff] }
 0x17f   :  { %v494_v15 = vld [vmem:[%s1247_s7 + $0x38] sm:$0xff] }
 0x181   :  { %174 = vrot.lane.b32.xlu1 %v171_v18, %s865_s3  ;;  %v408_v18 = vld [vmem:[%s1245_s5 + $0xf0] sm:$0xff] }
 0x185   :  { %200 = vrot.lane.b32.xlu1 %v197_v21, %s863_s0  ;;  %v780_v21 = vpack.c.bf16 %v409_v19, %v408_v18  ;;  %v496_v18 = vld [vmem:[%s1247_s7 + $0x48] sm:$0xff] }
 0x1ea   :  { %v199_v26 = vpop.permute.xlu0 %198 }
 0x1eb   :  { %v173_v22 = vpop.permute.xlu1 %172 }
 0x1ec   :  { %v211_v23 = vsel %vm46_vm0, %v157_v56, %v173_v22  ;;  %v384_v56 = vld [vmem:[%s1245_s5 + $0x30] sm:$0xff] }
 0x1ed   :  { %v766_v60 = vpack.c.bf16 %v385_v57, %v384_v56  ;;  %v392_v22 = vld [vmem:[%s1245_s5 + $0x70] sm:$0xff] }
 0x1ee   :  { %v188_v31 = vpop.permute.xlu0 %187 }
 0x1ef   :  { %v186_v25 = vpop.permute.xlu1 %185  ;;  %767 = vmatpush3.bf16.msra.mxu0 %v766_v60 }
 0x1f0   :  { %v214_v27 = vsel %vm213_vm6, %v211_v23, %v186_v25  ;;  %769 = vmatprep.subr.bf16.mxu0 %v768_v61  ;;  %v393_v23 = vld [vmem:[%s1245_s5 + $0x78] sm:$0xff] }
 0x1f1   :  { %v217_v28 = vsel %vm216_vm7, %v214_v27, %v199_v26  ;;  %v782_v27 = vpack.c.bf16 %v393_v23, %v392_v22  ;;  %v499_v23 = vld [vmem:[%s1247_s7 + $0x60] sm:$0xff] }
 0x1f2   :  { %315 = vmatmul.mubr.f32.vlgmr.msra.gmra.mrb[2].mxu1 %v217_v28 }
 0x1f3   :  { %v175_v29 = vpop.permute.xlu1 %174  ;;  %607 = vmatprep.mubr.msk.f32.mxu1 %vm46_vm0, %v210_v17  ;;  %771 = vmatpush3.bf16.msra.mxu0 %v770_v2 }
 0x1f4   :  { %v212_v30 = vsel %vm46_vm0, %v158_v5, %v175_v29  ;;  %v389_v5 = vld [vmem:[%s1245_s5 + $0x58] sm:$0xff]  ;;  %773 = vmatprep.subr.bf16.mxu0 %v772_v3 }
 0x1f5   :  { %v215_v33 = vsel %vm213_vm6, %v212_v30, %v188_v31  ;;  %v774_v6 = vpack.c.bf16 %v389_v5, %v388_v4  ;;  %v785_v5 = vpack.c.bf16 %v488_v63, %v487_v62 }
 0x1f7   :  { %v201_v32 = vpop.permute.xlu1 %200  ;;  %775 = vmatpush3.bf16.msra.mxu0 %v774_v6 }
 0x1f8   :  { %v218_v34 = vsel %vm216_vm7, %v215_v33, %v201_v32  ;;  %777 = vmatprep.subr.bf16.mxu0 %v776_v13  ;;  %v791_v13 = vpack.c.bf16 %v492_v12, %v491_v11 }
 0x1f9   :  { %320 = vmatmul.mubr.f32.gmra.mrb[4].mxu1 %v218_v34 }
 0x1fb   :  { %779 = vmatpush3.bf16.msra.mxu0 %v778_v16  ;;  %v794_v16 = vpack.c.bf16 %v494_v15, %v493_v14 }
 0x1fc   :  { %781 = vmatprep.subr.bf16.mxu0 %v780_v21  ;;  %v498_v21 = vld [vmem:[%s1247_s7 + $0x58] sm:$0xff] }
 0x1ff   :  { %783 = vmatpush3.bf16.msra.mxu0 %v782_v27  ;;  %v501_v27 = vld [vmem:[%s1247_s7 + $0x70] sm:$0xff] }
 0x200   :  { %784 = vmatprep.subr.bf16.mxu0 %v864_v24 }
 0x2c5   :  { %v316_v8 = vpop.f32.mrb[2].mxu1 }
 0x2c6   :  { %v318_v9 = vpop.f32.mrb[3].mxu1  ;;  %v317_v10 = vadd.f32 %v605_v7, %v316_v8  ;;  %v489_v8 = vld [vmem:[%s1247_s7 + $0x10] sm:$0xff] }
 0x2c7   :  { %v490_v9 = vld [vmem:[%s1247_s7 + $0x18] sm:$0xff] }
 0x2c8   :  { %v325_v17 = vmax.f32 %v317_v10, 0.0  ;;  %v788_v10 = vpack.c.bf16 %v490_v9, %v489_v8 }
 0x2ca   :  { %v338_v29 = vrot.slane %v325_v17, 2  ;;  %v333_v30 = vrot.slane %v325_v17, 1  ;;  %v360_v31 = vrot.slane %v325_v17, 6  ;;  %v354_v32 = vrot.slane %v325_v17, 5 }
 0x2cb   :  { %v344_v33 = vrot.slane %v325_v17, 3  ;;  %v366_v34 = vrot.slane %v325_v17, 7  ;;  %v350_v46 = vrot.slane %v325_v17, 4 }
 0x2cc   :  { %v321_v20 = vpop.f32.mrb[4].mxu1 }
 0x2cd   :  { %v322_v25 = vadd.f32 %v605_v7, %v321_v20  ;;  %v323_v26 = vpop.f32.mrb[5].mxu1  ;;  %v497_v20 = vld [vmem:[%s1247_s7 + $0x50] sm:$0xff] }
 0x2ce   :  { %v800_v22 = vpack.c.bf16 %v498_v21, %v497_v20 }
 0x2cf   :  { %v326_v28 = vmax.f32 %v322_v25, 0.0  ;;  %v500_v25 = vld [vmem:[%s1247_s7 + $0x68] sm:$0xff] }
 0x2d0   :  { %v803_v26 = vpack.c.bf16 %v500_v25, %v499_v23 }
 0x2d1   :  { %v339_v35 = vrot.slane %v326_v28, 1  ;;  %v361_v36 = vrot.slane %v326_v28, 5  ;;  %v334_v37 = vsel %vm330_vm8, %v326_v28, %v333_v30  ;;  %v355_v38 = vrot.slane %v326_v28, 4 }
 0x2d2   :  { %v345_v39 = vrot.slane %v326_v28, 2  ;;  %v367_v40 = vrot.slane %v326_v28, 6  ;;  %v351_v41 = vrot.slane %v326_v28, 3  ;;  %v329_v42 = vrot.slane %v326_v28, 7  ;;  %v502_v28 = vld [vmem:[%s1247_s7 + $0x78] sm:$0xff] }
 0x2d3   :  { %v340_v43 = vsel %vm330_vm8, %v339_v35, %v338_v29  ;;  %v362_v44 = vsel %vm330_vm8, %v361_v36, %v360_v31  ;;  %v356_v45 = vsel %vm330_vm8, %v355_v38, %v354_v32  ;;  %v806_v29 = vpack.c.bf16 %v502_v28, %v501_v27  ;;  %v608_v32 = vld [vmem:[%s1246_s6] ss:$0 sm:$0xff] }
 0x2d4   :  { %v821_v47 = vpack.i.bf16 %v340_v43, %v362_v44  ;;  %v816_v48 = vpack.i.bf16 %v334_v37, %v356_v45  ;;  %v346_v49 = vsel %vm330_vm8, %v345_v39, %v344_v33  ;;  %v368_v50 = vsel %vm330_vm8, %v367_v40, %v366_v34  ;;  %v609_v35 = vld [vmem:[%s1248_s8] ss:$0 sm:$0xff] }
 0x2d5   :  { %v826_v51 = vpack.i.bf16 %v346_v49, %v368_v50  ;;  %v352_v52 = vsel %vm330_vm8, %v351_v41, %v350_v46  ;;  %v331_v53 = vsel %vm330_vm8, %v329_v42, %v325_v17  ;;  %v495_v17 = vld [vmem:[%s1247_s7 + $0x40] sm:$0xff]  ;;  %v868_v30 = vmov 0.0   ;;  %s589_s7 = sshll.u32 %s869_s22, 4  ;;  %s590_s7 = int_to_ptr.vmem [resolvable:$true] %s589_s7 }
 0x2d6   :  { %822 = vrot.lane.b32.xlu1 %v821_v47, %s866_s17  ;;  %817 = vrot.lane.b32.xlu0 %v816_v48, %s865_s3  ;;  %v797_v19 = vpack.c.bf16 %v496_v18, %v495_v17  ;;  %s839_s23 = scalar_lea.vmem %s590_s7, 64  ;;  %p844_p1 = scmp.lt.s32.totalorder %s590_s7, %s590_s7 }
 0x2d7   :  { %p840_p0 = scmp.ne.s32.totalorder %s590_s7, %s839_s23  ;;  %p845_p2 = scmp.lt.s32.totalorder %s839_s23, %s839_s23 }
 0x2d9   :  { %p846_p3 = por %p845_p2, %p844_p1 }
 0x2da   :  { %827 = vrot.lane.b32.xlu0 %v826_v51, %s863_s0 }
 0x2db   :  { %p847_p4 = pnand %p846_p3, %p840_p0 }
 0x348   :  { %v823_v54 = vpop.permute.xlu1 %822  ;;  %v818_v55 = vpop.permute.xlu0 %817 }
 0x349   :  { %v820_v56 = vunpack.i.h.bf16 %v818_v55  ;;  %v819_v57 = vunpack.i.l.bf16 %v818_v55  ;;  %v825_v58 = vunpack.i.h.bf16 %v823_v54  ;;  %v824_v59 = vunpack.i.l.bf16 %v823_v54 }
 0x34b   :  { %v375_v60 = vsel %vm46_vm0, %v352_v52, %v819_v57  ;;  %v372_v61 = vsel %vm46_vm0, %v331_v53, %v820_v56 }
 0x34c   :  { %v828_v0 = vpop.permute.xlu0 %827  ;;  %v376_v3 = vsel %vm213_vm6, %v375_v60, %v824_v59  ;;  %v373_v4 = vsel %vm213_vm6, %v372_v61, %v825_v58 }
 0x34d   :  { %v830_v1 = vunpack.i.h.bf16 %v828_v0  ;;  %v829_v2 = vunpack.i.l.bf16 %v828_v0 }
 0x34f   :  { %v377_v6 = vsel %vm216_vm7, %v376_v3, %v829_v2  ;;  %v374_v7 = vsel %vm216_vm7, %v373_v4, %v830_v1 }
 0x350   :  { %481 = vmatprep.mubr.f32.mxu0 %v377_v6 }
 0x351   :  { %482 = vmatmul.mubr.f32.vlgmr.msra.gmra.mrb[0].mxu0 %v374_v7 }
 0x352   :  { %786 = vmatpush3.bf16.msra.mxu0 %v785_v5  ;;  %711 = vmatprep.mubr.msk.f32.mxu0 %vm867_vm9, %v868_v30 }
 0x353   :  { %787 = vmatprep.subr.bf16.mxu0 %v864_v24 }
 0x356   :  { %789 = vmatpush3.bf16.msra.mxu0 %v788_v10 }
 0x357   :  { %790 = vmatprep.subr.bf16.mxu0 %v864_v24 }
 0x35a   :  { %792 = vmatpush3.bf16.msra.mxu0 %v791_v13 }
 0x35b   :  { %793 = vmatprep.subr.bf16.mxu0 %v864_v24 }
 0x35e   :  { %795 = vmatpush3.bf16.msra.mxu0 %v794_v16 }
 0x35f   :  { %796 = vmatprep.subr.bf16.mxu0 %v864_v24 }
 0x362   :  { %798 = vmatpush3.bf16.msra.mxu0 %v797_v19 }
 0x363   :  { %799 = vmatprep.subr.bf16.mxu0 %v864_v24 }
 0x366   :  { %801 = vmatpush3.bf16.msra.mxu0 %v800_v22 }
 0x367   :  { %802 = vmatprep.subr.bf16.mxu0 %v864_v24 }
 0x36a   :  { %804 = vmatpush3.bf16.msra.mxu0 %v803_v26 }
 0x36b   :  { %805 = vmatprep.subr.bf16.mxu0 %v864_v24 }
 0x36e   :  { %807 = vmatpush3.bf16.msra.mxu0 %v806_v29 }
 0x424   :  { %v648_v31 = vpop.f32.mrb[0].mxu0 }
 0x425   :  { %v649_v33 = vpop.f32.mrb[1].mxu0 }
 0x426   :  { %v650_v24 = vadd.f32 %v649_v33, %v648_v31 }
 0x428   :  { %v484_v34 = vadd.f32 %v650_v24, %v608_v32 }
 0x42a   :  { %712 = vmatmul.mubr.f32.vlgmr.msra.gmra.mrb[2].mxu0 %v484_v34 }
 0x4fd   :  { %v576_v36 = vpop.f32.mrb[2].mxu0 }
 0x4fe   :  { %v577_v37 = vadd.f32 %v609_v35, %v576_v36  ;;  %v713_v38 = vpop.f32.mrb[3].mxu0 }
 0x500   :  { %581 = vst.msk [vmem:[#allocation2] sm:$0x3] %vm580_vm10, %v577_v37  ;;  %583 = vst.msk [vmem:[#allocation2 + $0x2] sm:$0x3] %vm580_vm10, %v577_v37 }
 0x501   :  { %850 = shalt.err (!%p847_p4)
}
 0x502   :  { %s851_s8 = scalar_lea.hbm %s1249_s9, 64 }
 0x503   :  { %p852_p5 = scmp.ne.s32.totalorder %s1249_s9, %s851_s8  ;;  %p855_p6 = scmp.lt.u32.totalorder %s851_s8, %s1249_s9 }
 0x505   :  { %p857_p7 = pnand %p855_p6, %p852_p5 }
 0x507   :  { %860 = shalt.err (!%p857_p7)
}
 0x508   :  { %s870_s29 = smov 2  }
 0x509   :  { %595 = dma.vmem_to_hbm [thread:$0]  %s590_s7, 64, %s1249_s9, [#allocation3], %s865_s3, %s865_s3, %s870_s29  }
 0x50a   :  { %861 = dma.done.wait [#allocation3], 64  }
 0x50b   :  { %862 = vsyncadd [#allocation3], 4294967232 }
 0x50c   :  { %599 = vsyncpa [#allocation3], 1 }

</bundles_post_ra>
